<compile_context>
chip_gen: v5e
topology: v5e:2x2
jax: 0.10.0
libtpu: 0.0.40
codegen_flags: <defaults>
</compile_context>

<pallas_src>
import jax
import jax.numpy as jnp
from jax.experimental import pallas as pl
from jax.experimental.pallas import tpu as pltpu  # noqa: F401  (TPU backend)


def conv3x3_tanh_kernel(cols_ref, w_ref, b_ref, o_ref):
    """Single-block conv-as-matmul + bias + tanh.

    cols_ref: (K, N)      im2col slab, K = 9*C_in, N = B*H*W (lane-dense)
    w_ref:    (C_out, K)  flattened conv weights
    b_ref:    (C_out, 1)  conv bias
    o_ref:    (C_out, N)  lane-dense output
    """
    acc = jnp.dot(w_ref[...], cols_ref[...], preferred_element_type=jnp.float32)
    o_ref[...] = jnp.tanh(acc + b_ref[...]).astype(o_ref.dtype)


def attention_ins_decoder_forward(x_nchw, weight, bias):
    """Forward pass of AttentionInsDecoder.

    x_nchw : (B, C_in, H, W)     float32 (PyTorch layout)
    weight : (3, 3, C_in, C_out) float32 (HWIO; permute PyTorch OIHW by (2,3,1,0))
    bias   : (C_out,)            float32
    returns: (B, C_out, H, W)    float32 (PyTorch layout)
    """
    B, C_in, H, W = x_nchw.shape
    C_out = weight.shape[-1]
    K = 9 * C_in
    N = B * H * W

    # ---- wrapper-side layout plumbing (glue) ----
    x_nhwc = jnp.transpose(x_nchw, (0, 2, 3, 1))                    # (B, H, W, C)
    x_pad = jnp.pad(x_nhwc, ((0, 0), (1, 1), (1, 1), (0, 0)), mode="reflect")

    # im2col: (B, H, W, 9, C_in) -> (N, K) -> (K, N) so spatial dim is lane-dense.
    shifts = [x_pad[:, dy:dy + H, dx:dx + W, :]
              for dy in range(3) for dx in range(3)]
    patches = jnp.stack(shifts, axis=3)                             # (B, H, W, 9, C)
    cols_t = patches.reshape(N, K).T                                # (K, N)

    w_flat_t = weight.reshape(K, C_out).T                           # (C_out, K)
    bias2d = bias.reshape(C_out, 1)                                 # (C_out, 1)

    # ---- single-block Pallas call: one matmul + bias + tanh ----
    out_flat = pl.pallas_call(
        conv3x3_tanh_kernel,
        out_shape=jax.ShapeDtypeStruct((C_out, N), jnp.float32),
        grid=(1,),
        in_specs=[
            pl.BlockSpec((K, N), lambda i: (0, 0)),
            pl.BlockSpec((C_out, K), lambda i: (0, 0)),
            pl.BlockSpec((C_out, 1), lambda i: (0, 0)),
        ],
        out_specs=pl.BlockSpec((C_out, N), lambda i: (0, 0)),
    )(cols_t, w_flat_t, bias2d)                                     # (C_out, N)

    # back to PyTorch NCHW layout
    out = out_flat.reshape(C_out, B, H, W).transpose(1, 0, 2, 3)    # (B, C_out, H, W)
    return out


if __name__ == "__main__":
    # Module config: scale=0 -> in_channels = num_ch_dec[0] = 16,
    #                num_output_channels = 1.
    B, C_IN, H, W = 2, 16, 16, 16
    C_OUT = 1

    key = jax.random.PRNGKey(0)
    kx, kw, kb = jax.random.split(key, 3)

    x = jax.random.normal(kx, (B, C_IN, H, W), dtype=jnp.float32)

    # Deterministic parameter init (mimic PyTorch Conv2d uniform(-1/sqrt(fan_in), ..)).
    fan_in = C_IN * 3 * 3
    bound = 1.0 / jnp.sqrt(jnp.float32(fan_in))
    weight = jax.random.uniform(
        kw, (3, 3, C_IN, C_OUT), minval=-bound, maxval=bound, dtype=jnp.float32
    )
    bias = jax.random.uniform(
        kb, (C_OUT,), minval=-bound, maxval=bound, dtype=jnp.float32
    )

    out = attention_ins_decoder_forward(x, weight, bias)
    jax.block_until_ready(out)

    # Shape check vs PyTorch output (B, num_output_channels, H, W).
    assert out.shape == (B, C_OUT, H, W), out.shape

    # Numerical check against a plain-JAX reference of the same conv + tanh.
    x_nhwc = jnp.transpose(x, (0, 2, 3, 1))
    x_pad = jnp.pad(x_nhwc, ((0, 0), (1, 1), (1, 1), (0, 0)), mode="reflect")
    shifts = [x_pad[:, dy:dy + H, dx:dx + W, :]
              for dy in range(3) for dx in range(3)]
    patches = jnp.stack(shifts, axis=3).reshape(B * H * W, 9 * C_IN)
    ref = jnp.tanh(patches @ weight.reshape(9 * C_IN, C_OUT) + bias)
    ref = ref.reshape(B, H, W, C_OUT).transpose(0, 3, 1, 2)
    assert jnp.allclose(out, ref, atol=1e-5, rtol=1e-5), float(
        jnp.max(jnp.abs(out - ref))
    )

    print("KERNEL_OK")
</pallas_src>

<mosaic_0001>
module attributes {stable_mosaic.version = 11 : i64} {
  func.func @conv3x3_tanh_kernel(%arg0: i32, %arg1: memref<144x512xf32, #tpu.memory_space<vmem>>, %arg2: memref<1x144xf32, #tpu.memory_space<vmem>>, %arg3: memref<1x1xf32, #tpu.memory_space<vmem>>, %arg4: memref<1x512xf32, #tpu.memory_space<vmem>>) attributes {dimension_semantics = [#tpu.dimension_semantics<arbitrary>], iteration_bounds = array<i64: 1>, scalar_prefetch = 0 : i64, scratch_operands = 0 : i64, tpu.core_type = #tpu.core_type<tc>, window_params = [{pipeline_mode = #tpu.pipeline_mode<synchronous>, transform_indices = @transform_0, window_bounds = array<i64: 144, 512>}, {pipeline_mode = #tpu.pipeline_mode<synchronous>, transform_indices = @transform_1, window_bounds = array<i64: 1, 144>}, {pipeline_mode = #tpu.pipeline_mode<synchronous>, transform_indices = @transform_2, window_bounds = array<i64: 1, 1>}, {pipeline_mode = #tpu.pipeline_mode<synchronous>, transform_indices = @transform_3, window_bounds = array<i64: 1, 512>}]} {
    %c0 = arith.constant 0 : index
    %c0_0 = arith.constant 0 : index
    %0 = vector.load %arg2[%c0, %c0_0] : memref<1x144xf32, #tpu.memory_space<vmem>>, vector<1x144xf32>
    %c0_1 = arith.constant 0 : index
    %c0_2 = arith.constant 0 : index
    %1 = vector.load %arg1[%c0_1, %c0_2] : memref<144x512xf32, #tpu.memory_space<vmem>>, vector<144x512xf32>
    %cst = arith.constant dense<0.000000e+00> : vector<1x512xf32>
    %2 = tpu.matmul %0, %1, %cst {dimension_numbers = #tpu.dot_dimension_numbers<[1], [0], [0], [1], [0, 0, 1, 1], [], []>} : vector<1x144xf32>, vector<144x512xf32>, vector<1x512xf32> -> vector<1x512xf32>
    %c0_3 = arith.constant 0 : index
    %c0_4 = arith.constant 0 : index
    %3 = vector.load %arg3[%c0_3, %c0_4] : memref<1x1xf32, #tpu.memory_space<vmem>>, vector<1x1xf32>
    %4 = vector.broadcast %3 : vector<1x1xf32> to vector<1x512xf32>
    %5 = arith.addf %2, %4 : vector<1x512xf32>
    %6 = math.tanh %5 : vector<1x512xf32>
    %c0_5 = arith.constant 0 : index
    %c0_6 = arith.constant 0 : index
    %7 = vector.load %arg4[%c0_5, %c0_6] : memref<1x512xf32, #tpu.memory_space<vmem>>, vector<1x512xf32>
    tpu.vector_store %arg4[%c0_5, %c0_6], %6 {strides = array<i32>} : memref<1x512xf32, #tpu.memory_space<vmem>>, vector<1x512xf32>,
    return
  }
  func.func @transform_0(%arg0: i32) -> (i32, i32) {
    %c0_i32 = arith.constant 0 : i32
    %c0_i32_0 = arith.constant 0 : i32
    %c0_i32_1 = arith.constant 0 : i32
    return %c0_i32, %c0_i32_0 : i32, i32
  }
  func.func @transform_1(%arg0: i32) -> (i32, i32) {
    %c0_i32 = arith.constant 0 : i32
    %c0_i32_0 = arith.constant 0 : i32
    %c0_i32_1 = arith.constant 0 : i32
    return %c0_i32, %c0_i32_0 : i32, i32
  }
  func.func @transform_2(%arg0: i32) -> (i32, i32) {
    %c0_i32 = arith.constant 0 : i32
    %c0_i32_0 = arith.constant 0 : i32
    %c0_i32_1 = arith.constant 0 : i32
    return %c0_i32, %c0_i32_0 : i32, i32
  }
  func.func @transform_3(%arg0: i32) -> (i32, i32) {
    %c0_i32 = arith.constant 0 : i32
    %c0_i32_0 = arith.constant 0 : i32
    %c0_i32_1 = arith.constant 0 : i32
    return %c0_i32, %c0_i32_0 : i32, i32
  }
}

</mosaic_0001>

<bundles_post_ra>
// kernel: tpu_custom_call.1
= control target key start
LH: loop header
LB: loop body
LE: loop exit
PB: predicated region body
PF: predicated region fallthrough
CT: control target
= control target key end

     0   :  { %s431_s0 = inlined_call_operand.hbm [shape: f32[144,512], index: 0, kind: input, shape index: {}]   ;;  %s432_s1 = inlined_call_operand.vmem [shape: f32[1,144], index: 1, kind: input, shape index: {}]   ;;  %s433_s2 = inlined_call_operand.<no memory space> [shape: f32[1,1], index: 2, kind: input, shape index: {}]   ;;  %s434_s3 = inlined_call_operand.hbm [shape: f32[1,512], index: 3, kind: output, shape index: {}]  }
   0x1   :  { %v8_v0 = vstv %s433_s2 }
   0x2   :  { %9 = vst [vmem:[#allocation2] sm:$0x1] %v8_v0 }
   0x3   :  { %10 = vsyncpa [#allocation4], 0 }
   0x4   :  { %11 = vsyncpa [#allocation5], 0  ;;  %s16_s16 = sshll.u32 %s431_s0, 4  ;;  %s390_s17 = smov [#allocation3]   ;;  %s17_s16 = int_to_ptr.hbm [resolvable:$true] %s16_s16 }
   0x5   :  { %s18_s18 = sshll.u32 %s390_s17, 4  ;;  %s391_s19 = smov 512   ;;  %s19_s18 = int_to_ptr.vmem [resolvable:$true] %s18_s18 }
   0x6   :  { %s392_s20 = smov 32  }
   0x7   :  { %24 = dma.hbm_to_vmem [thread:$0]  %s17_s16, 9216, %s19_s18, [#allocation4], %s391_s19, %s391_s19, %s392_s20  }
   0x8   :  { %386 = dma.done.wait [#allocation4], 9216  }
   0x9   :  { %387 = vsyncadd [#allocation4], 4294958080  ;;  %v102_v1 = vld [vmem:[#allocation3 + $0x220] sm:$0xff]  ;;  %v95_v2 = vld [vmem:[#allocation3 + $0x1e8] sm:$0xff]  ;;  %vm117_vm0 = vcmask 130048   ;;  %vm293_vm1 = vcmask 1042434  }
   0xa   :  { %v104_v3 = vld [vmem:[#allocation3 + $0x230] sm:$0xff]  ;;  %154 = vmatpush.msra.mxu1 %v102_v1  ;;  %160 = vmatpush.msra.mxu2 %v95_v2  ;;  %v94_v4 = vld [vmem:[#allocation3 + $0x1e0] sm:$0xff]  ;;  %v91_v6 = vld [vmem:[#allocation3 + $0x1c8] sm:$0xff]  ;;  %vm291_vm2 = vcmask 1040384   ;;  %s310_s24 = sshll.u32 %s434_s3, 4  ;;  %vm295_vm3 = vcmask 1041408   ;;  %s311_s24 = int_to_ptr.hbm [resolvable:$true] %s310_s24 }
   0xb   :  { %v98_v5 = vld [vmem:[#allocation3 + $0x200] sm:$0xff]  ;;  %234 = vmatpush.msra.mxu3 %v104_v3  ;;  %120 = vmatpush.msra.mxu0 %v94_v4  ;;  %v100_v7 = vld [vmem:[#allocation3 + $0x210] sm:$0xff]  ;;  %v97_v9 = vld [vmem:[#allocation3 + $0x1f8] sm:$0xff] }
   0xc   :  { %v96_v8 = vld [vmem:[#allocation3 + $0x1f0] sm:$0xff]  ;;  %155 = vmatpush.msra.mxu1 %v98_v5  ;;  %161 = vmatpush.msra.mxu2 %v91_v6  ;;  %v90_v10 = vld [vmem:[#allocation3 + $0x1c0] sm:$0xff]  ;;  %v87_v11 = vld [vmem:[#allocation3 + $0x1a8] sm:$0xff] }
   0xd   :  { %v92_v12 = vld [vmem:[#allocation3 + $0x1d0] sm:$0xff]  ;;  %235 = vmatpush.msra.mxu3 %v100_v7  ;;  %v93_v13 = vld [vmem:[#allocation3 + $0x1d8] sm:$0xff]  ;;  %v86_v14 = vld [vmem:[#allocation3 + $0x1a0] sm:$0xff]  ;;  %121 = vmatpush.msra.mxu0 %v90_v10 }
   0xe   :  { %200 = vmatpush.msrb.mxu1 %v96_v8  ;;  %v83_v15 = vld [vmem:[#allocation3 + $0x188] sm:$0xff]  ;;  %v88_v16 = vld [vmem:[#allocation3 + $0x1b0] sm:$0xff]  ;;  %162 = vmatpush.msra.mxu2 %v87_v11  ;;  %v89_v17 = vld [vmem:[#allocation3 + $0x1b8] sm:$0xff] }
   0xf   :  { %240 = vmatpush.msrb.mxu3 %v97_v9  ;;  %v82_v18 = vld [vmem:[#allocation3 + $0x180] sm:$0xff]  ;;  %122 = vmatpush.msra.mxu0 %v86_v14  ;;  %v79_v19 = vld [vmem:[#allocation3 + $0x168] sm:$0xff]  ;;  %v84_v20 = vld [vmem:[#allocation3 + $0x190] sm:$0xff] }
  0x10   :  { %201 = vmatpush.msrb.mxu1 %v92_v12  ;;  %163 = vmatpush.msra.mxu2 %v83_v15  ;;  %v85_v21 = vld [vmem:[#allocation3 + $0x198] sm:$0xff]  ;;  %v78_v22 = vld [vmem:[#allocation3 + $0x160] sm:$0xff]  ;;  %v75_v23 = vld [vmem:[#allocation3 + $0x148] sm:$0xff] }
  0x11   :  { %241 = vmatpush.msrb.mxu3 %v93_v13  ;;  %123 = vmatpush.msra.mxu0 %v82_v18  ;;  %v80_v24 = vld [vmem:[#allocation3 + $0x170] sm:$0xff]  ;;  %v81_v25 = vld [vmem:[#allocation3 + $0x178] sm:$0xff]  ;;  %v74_v26 = vld [vmem:[#allocation3 + $0x140] sm:$0xff]  ;;  %v393_v13 = vmov 0  }
  0x12   :  { %202 = vmatpush.msrb.mxu1 %v88_v16  ;;  %164 = vmatpush.msra.mxu2 %v79_v19  ;;  %v71_v27 = vld [vmem:[#allocation3 + $0x128] sm:$0xff]  ;;  %v76_v28 = vld [vmem:[#allocation3 + $0x150] sm:$0xff]  ;;  %v77_v29 = vld [vmem:[#allocation3 + $0x158] sm:$0xff] }
  0x13   :  { %242 = vmatpush.msrb.mxu3 %v89_v17  ;;  %124 = vmatpush.msra.mxu0 %v78_v22  ;;  %v70_v30 = vld [vmem:[#allocation3 + $0x120] sm:$0xff]  ;;  %v67_v31 = vld [vmem:[#allocation3 + $0x108] sm:$0xff]  ;;  %v72_v32 = vld [vmem:[#allocation3 + $0x130] sm:$0xff] }
  0x14   :  { %203 = vmatpush.msrb.mxu1 %v84_v20  ;;  %165 = vmatpush.msra.mxu2 %v75_v23  ;;  %v73_v33 = vld [vmem:[#allocation3 + $0x138] sm:$0xff]  ;;  %v66_v34 = vld [vmem:[#allocation3 + $0x100] sm:$0xff]  ;;  %v63_v35 = vld [vmem:[#allocation3 + $0xe8] sm:$0xff] }
  0x15   :  { %243 = vmatpush.msrb.mxu3 %v85_v21  ;;  %125 = vmatpush.msra.mxu0 %v74_v26  ;;  %v68_v36 = vld [vmem:[#allocation3 + $0x110] sm:$0xff]  ;;  %v69_v37 = vld [vmem:[#allocation3 + $0x118] sm:$0xff]  ;;  %v62_v38 = vld [vmem:[#allocation3 + $0xe0] sm:$0xff] }
  0x16   :  { %204 = vmatpush.msrb.mxu1 %v80_v24  ;;  %166 = vmatpush.msra.mxu2 %v71_v27  ;;  %v59_v39 = vld [vmem:[#allocation3 + $0xc8] sm:$0xff]  ;;  %v64_v40 = vld [vmem:[#allocation3 + $0xf0] sm:$0xff]  ;;  %v65_v41 = vld [vmem:[#allocation3 + $0xf8] sm:$0xff] }
  0x17   :  { %244 = vmatpush.msrb.mxu3 %v81_v25  ;;  %126 = vmatpush.msra.mxu0 %v70_v30  ;;  %v58_v42 = vld [vmem:[#allocation3 + $0xc0] sm:$0xff]  ;;  %v55_v43 = vld [vmem:[#allocation3 + $0xa8] sm:$0xff]  ;;  %v60_v44 = vld [vmem:[#allocation3 + $0xd0] sm:$0xff] }
  0x18   :  { %205 = vmatpush.msrb.mxu1 %v76_v28  ;;  %167 = vmatpush.msra.mxu2 %v67_v31  ;;  %v61_v45 = vld [vmem:[#allocation3 + $0xd8] sm:$0xff]  ;;  %v54_v46 = vld [vmem:[#allocation3 + $0xa0] sm:$0xff]  ;;  %v51_v47 = vld [vmem:[#allocation3 + $0x88] sm:$0xff] }
  0x19   :  { %245 = vmatpush.msrb.mxu3 %v77_v29  ;;  %127 = vmatpush.msra.mxu0 %v66_v34  ;;  %v56_v48 = vld [vmem:[#allocation3 + $0xb0] sm:$0xff]  ;;  %v33_v49 = vld [vmem:[%s432_s1] sm:$0x3]  ;;  %v47_v52 = vld [vmem:[#allocation3 + $0x68] sm:$0xff]  ;;  %v298_v34 = vlaneseq  ;;  %s394_s1 = smov [#allocation6]  }
  0x1a   :  { %206 = vmatpush.msrb.mxu1 %v72_v32  ;;  %168 = vmatpush.msra.mxu2 %v63_v35  ;;  %v57_v50 = vld [vmem:[#allocation3 + $0xb8] sm:$0xff]  ;;  %v50_v51 = vld [vmem:[#allocation3 + $0x80] sm:$0xff]  ;;  %v52_v53 = vld [vmem:[#allocation3 + $0x90] sm:$0xff]  ;;  %v115_v56 = vperm.slane %v33_v49, 1  ;;  %v114_v2 = vperm.slane %v33_v49, 0  ;;  %s308_s21 = sshll.u32 %s394_s1, 4  ;;  %s309_s21 = int_to_ptr.vmem [resolvable:$true] %s308_s21 }
  0x1b   :  { %246 = vmatpush.msrb.mxu3 %v73_v33  ;;  %128 = vmatpush.msra.mxu0 %v62_v38  ;;  %v53_v54 = vld [vmem:[#allocation3 + $0x98] sm:$0xff]  ;;  %v46_v55 = vld [vmem:[#allocation3 + $0x60] sm:$0xff]  ;;  %v43_v57 = vld [vmem:[#allocation3 + $0x48] sm:$0xff]  ;;  %vm300_vm4 = vcmp.lt.s32.totalorder %v298_v34, 512 }
  0x1c   :  { %207 = vmatpush.msrb.mxu1 %v68_v36  ;;  %169 = vmatpush.msra.mxu2 %v59_v39  ;;  %v48_v58 = vld [vmem:[#allocation3 + $0x70] sm:$0xff]  ;;  %v49_v59 = vld [vmem:[#allocation3 + $0x78] sm:$0xff]  ;;  %v42_v60 = vld [vmem:[#allocation3 + $0x40] sm:$0xff] }
  0x1d   :  { %247 = vmatpush.msrb.mxu3 %v69_v37  ;;  %129 = vmatpush.msra.mxu0 %v58_v42  ;;  %v39_v61 = vld [vmem:[#allocation3 + $0x28] sm:$0xff]  ;;  %v44_v62 = vld [vmem:[#allocation3 + $0x50] sm:$0xff]  ;;  %v45_v63 = vld [vmem:[#allocation3 + $0x58] sm:$0xff] }
  0x1e   :  { %208 = vmatpush.msrb.mxu1 %v64_v40  ;;  %170 = vmatpush.msra.mxu2 %v55_v43  ;;  %v38_v0 = vld [vmem:[#allocation3 + $0x20] sm:$0xff]  ;;  %v35_v1 = vld [vmem:[#allocation3 + $0x8] sm:$0xff]  ;;  %v40_v3 = vld [vmem:[#allocation3 + $0x30] sm:$0xff] }
  0x1f   :  { %248 = vmatpush.msrb.mxu3 %v65_v41  ;;  %130 = vmatpush.msra.mxu0 %v54_v46  ;;  %v41_v4 = vld [vmem:[#allocation3 + $0x38] sm:$0xff]  ;;  %v103_v5 = vld [vmem:[#allocation3 + $0x228] sm:$0xff]  ;;  %v34_v6 = vld [vmem:[#allocation3] sm:$0xff] }
  0x20   :  { %209 = vmatpush.msrb.mxu1 %v60_v44  ;;  %171 = vmatpush.msra.mxu2 %v51_v47  ;;  %v36_v7 = vld [vmem:[#allocation3 + $0x10] sm:$0xff]  ;;  %v37_v8 = vld [vmem:[#allocation3 + $0x18] sm:$0xff]  ;;  %v99_v9 = vld [vmem:[#allocation3 + $0x208] sm:$0xff] }
  0x21   :  { %249 = vmatpush.msrb.mxu3 %v61_v45  ;;  %131 = vmatpush.msra.mxu0 %v50_v51  ;;  %v105_v10 = vld [vmem:[#allocation3 + $0x238] sm:$0xff] }
  0x22   :  { %210 = vmatpush.msrb.mxu1 %v56_v48  ;;  %172 = vmatpush.msra.mxu2 %v47_v52  ;;  %v106_v11 = vld [vmem:[#allocation2] sm:$0x1] }
  0x23   :  { %250 = vmatpush.msrb.mxu3 %v57_v50  ;;  %132 = vmatpush.msra.mxu0 %v46_v55  ;;  %v101_v12 = vld [vmem:[#allocation3 + $0x218] sm:$0xff] }
  0x24   :  { %211 = vmatpush.msrb.mxu1 %v52_v53  ;;  %173 = vmatpush.msra.mxu2 %v43_v57 }
  0x25   :  { %251 = vmatpush.msrb.mxu3 %v53_v54  ;;  %320 = vmatmul.msk.f32.vlgmr.msra.gmra.mxu1 %vm117_vm0, %v115_v56 }
  0x26   :  { %322 = vmatmul.msk.f32.vlgmr.msra.gmra.mxu3 %vm117_vm0, %v115_v56  ;;  %212 = vmatpush.msrb.mxu1 %v48_v58 }
  0x27   :  { %252 = vmatpush.msrb.mxu3 %v49_v59  ;;  %133 = vmatpush.msra.mxu0 %v42_v60 }
  0x28   :  { %174 = vmatpush.msra.mxu2 %v39_v61  ;;  %213 = vmatpush.msrb.mxu1 %v44_v62 }
  0x29   :  { %253 = vmatpush.msrb.mxu3 %v45_v63  ;;  %134 = vmatpush.msra.mxu0 %v38_v0 }
  0x2a   :  { %175 = vmatpush.msra.mxu2 %v35_v1  ;;  %214 = vmatpush.msrb.mxu1 %v40_v3 }
  0x2b   :  { %176 = vmatmul.f32.vlgmr.msra.gmra.mxu2 %v114_v2  ;;  %254 = vmatpush.msrb.mxu3 %v41_v4 }
  0x2c   :  { %194 = vmatpush.msrb.mxu2 %v103_v5  ;;  %135 = vmatpush.msra.mxu0 %v34_v6 }
  0x2d   :  { %136 = vmatmul.f32.vlgmr.msra.gmra.mxu0 %v114_v2  ;;  %215 = vmatpush.msrb.mxu1 %v36_v7 }
  0x2e   :  { %255 = vmatpush.msrb.mxu3 %v37_v8  ;;  %216 = vmatmul.f32.vlgmr.msrb.gmra.mxu1 %v114_v2 }
  0x2f   :  { %256 = vmatmul.f32.vlgmr.msrb.gmra.mxu3 %v114_v2  ;;  %195 = vmatpush.msrb.mxu2 %v99_v9 }
  0x30   :  { %274 = vmatpush.msrb.mxu0 %v105_v10  ;;  %329 = vset.pattern.permute.xlu0 %v393_v13 }
  0x31   :  { %109 = vperm.xlu0 %329, %v106_v11  }
  0x32   :  { %275 = vmatpush.msrb.mxu0 %v101_v12 }
  0x33   :  { %321 = vmatmul.msk.f32.vlgmr.msrb.gmra.mxu2 %vm117_vm0, %v115_v56 }
  0x35   :  { %323 = vmatmul.msk.f32.vlgmr.msrb.gmra.mxu0 %vm117_vm0, %v115_v56 }
  0xa2   :  { %v157_v14 = vpop.f32.mrf.mxu1 }
  0xa3   :  { %v110_v15 = vpop.permute.xlu0 %109 }
  0xa4   :  { %v112_v17 = vperm.slane %v110_v15, 0 }
  0xa9   :  { %v237_v16 = vpop.f32.mrf.mxu3 }
  0xaa   :  { %v137_v18 = vpop.f32.mrf.mxu0 }
  0xab   :  { %v217_v19 = vpop.f32.mrf.mxu1  ;;  %v138_v25 = vadd.f32 %v137_v18, %v112_v17 }
  0xac   :  { %v218_v20 = vadd.f32 %v217_v19, %v112_v17 }
  0xad   :  { %v158_v30 = vadd.f32 %v157_v14, %v138_v25 }
  0xae   :  { %v177_v21 = vpop.f32.mrf.mxu2  ;;  %v238_v22 = vadd.f32 %v237_v16, %v218_v20 }
  0xaf   :  { %v178_v27 = vadd.f32 %v177_v21, %v112_v17 }
  0xb0   :  { %330 = vtanh.f32 %v238_v22 }
  0xb2   :  { %v257_v23 = vpop.f32.mrf.mxu3  ;;  %v277_v24 = vpop.f32.mrf.mxu0 }
  0xb3   :  { %v258_v26 = vadd.f32 %v257_v23, %v112_v17 }
  0xb5   :  { %v278_v28 = vadd.f32 %v277_v24, %v258_v26 }
  0xb6   :  { %v197_v29 = vpop.f32.mrf.mxu2  ;;  %v331_v32 = vpop.eup %330 }
  0xb7   :  { %332 = vtanh.f32 %v278_v28  ;;  %v198_v31 = vadd.f32 %v197_v29, %v178_v27  ;;  %v289_v37 = vrot.slane %v331_v32, 6 }
  0xb9   :  { %334 = vtanh.f32 %v198_v31 }
  0xba   :  { %336 = vtanh.f32 %v158_v30 }
  0xbd   :  { %v333_v33 = vpop.eup %332 }
  0xbe   :  { %v290_v35 = vrot.slane %v333_v33, 5 }
  0xbf   :  { %v335_v36 = vpop.eup %334 }
  0xc0   :  { %v288_v38 = vrot.slane %v335_v36, 7  ;;  %v337_v39 = vpop.eup %336  ;;  %v294_v40 = vsel %vm293_vm1, %v289_v37, %v290_v35 }
  0xc2   :  { %v292_v41 = vsel %vm291_vm2, %v337_v39, %v288_v38 }
  0xc3   :  { %v296_v42 = vsel %vm295_vm3, %v292_v41, %v294_v40 }
  0xc4   :  { %302 = vst.msk [vmem:[#allocation6] sm:$0xf] %vm300_vm4, %v296_v42 }
  0xc5   :  { %313 = dma.vmem_to_hbm [thread:$0]  %s309_s21, 64, %s311_s24, [#allocation5]  }
  0xc6   :  { %388 = dma.done.wait [#allocation5], 64  }
  0xc7   :  { %389 = vsyncadd [#allocation5], 4294967232 }
  0xc8   :  { %318 = vsyncpa [#allocation4], 1 }
  0xc9   :  { %319 = vsyncpa [#allocation5], 1 }

</bundles_post_ra>
